<compile_context>
chip_gen: v5e
topology: v5e:2x2
jax: 0.10.0
libtpu: 0.0.40
codegen_flags: <defaults>
</compile_context>

<pallas_src>
import math
import functools

import jax
import jax.numpy as jnp
from jax import lax
from jax.experimental import pallas as pl
from jax.experimental.pallas import tpu as pltpu


def _group_lorentz_linear_kernel(x_ref, w_ref, o_ref, *, k):
    # x_ref : (TM, lin)     double-buffered input-row tile
    # w_ref : (out_p, lin)  VMEM-resident weight (PyTorch layout; row 0 zeroed)
    # o_ref : (TM, out_p)   lane-dense output tile (out_p % 128 == 0)
    #
    # y = x @ W^T : contract the lin axis of both operands on the MXU.
    y = lax.dot_general(
        x_ref[...], w_ref[...],
        dimension_numbers=(((1,), (1,)), ((), ())),
        preferred_element_type=jnp.float32)

    # Weight row 0 and all padding rows are zero, so sum(y^2) == ||space||^2
    # exactly (no cancellation-prone subtraction, no clamp needed).
    sq_space = jnp.sum(y * y, axis=-1, keepdims=True)
    time = jnp.sqrt(k + sq_space)

    # Blend the time coordinate into column 0 of the single unmasked full-lane
    # store (avoids a serialized lane-width-1 masked column store).
    col = lax.broadcasted_iota(jnp.int32, y.shape, 1)
    o_ref[...] = jnp.where(col == 0, time, y).astype(o_ref.dtype)


def _vmem_capacity_bytes():
    """Generation-aware VMEM capacity (128 MiB v5e/v6e, 64 MiB v7x)."""
    try:
        cap = int(pltpu.get_tpu_info().vmem_capacity_bytes)
        if cap > 0:
            return cap
    except Exception:
        pass
    return 64 * 1024 * 1024  # conservative fallback (v7x per-TC VMEM)


def _pick_tm(lin, out_p, budget_bytes, w_elem_bytes, io_elem_bytes, tm_max=8192):
    """Largest row tile (multiple of 8, <= tm_max) such that the single-buffered
    resident weight plus double-buffered x / out tiles fit the VMEM budget."""
    w_bytes = out_p * lin * w_elem_bytes            # Buffered(1): one weight copy
    per_row = 2 * (lin + out_p) * io_elem_bytes     # double-buffered x + out rows
    avail = budget_bytes - w_bytes
    if avail < per_row * 8:
        # TODO(synk): weight too large for a resident copy; see N-axis TODO above.
        return 8
    return max(8, min((avail // per_row) // 8 * 8, tm_max))


def group_lorentz_linear(x, weight, k=1.0, tm=None, weight_dtype=None):
    """x: (..., lin_features); weight: (out_features, lin_features) (PyTorch layout)."""
    *lead, lin = x.shape
    out_features, lin_w = weight.shape
    assert lin_w == lin
    assert out_features >= 1

    m = math.prod(lead) if lead else 1
    x2 = x.reshape(m, lin)

    # Lane-dense output: zero-pad out_features to a multiple of 128 so output
    # stores are unmasked full-lane vst's.  Padding rows contribute nothing.
    # Row 0 is zeroed too: its output column is overwritten by the time
    # coordinate, and zeroing it makes sum(y^2) == ||space||^2 exactly.
    out_p = ((out_features + 127) // 128) * 128
    w = weight.at[0, :].set(0.0)
    if out_p != out_features:
        w = jnp.pad(w, ((0, out_p - out_features), (0, 0)))
    if weight_dtype is not None:
        # Accuracy-contingent option: bf16 weight -> single-pass MXU, half the
        # weight HBM fetch / VMEM residency.  Accumulation stays f32.
        w = w.astype(weight_dtype)

    cap = _vmem_capacity_bytes()
    budget = int(0.70 * cap)       # tile-picker budget
    vmem_limit = int(0.80 * cap)   # compiler scoped-VMEM limit, with headroom

    if tm is None:
        tm = _pick_tm(lin, out_p, budget,
                      w_elem_bytes=w.dtype.itemsize,
                      io_elem_bytes=x.dtype.itemsize)

    # Keep at least two (balanced) grid steps so the "parallel" M axis gives
    # v7x's second TensorCore work; one extra cheap step on single-TC v5e/v6e.
    m8 = ((m + 7) // 8) * 8
    if m8 >= 16:
        tm = min(tm, ((m8 // 2 + 7) // 8) * 8)
    tm = max(8, min((tm // 8) * 8, m8))
    grid_m = pl.cdiv(m, tm)

    kernel = functools.partial(_group_lorentz_linear_kernel, k=float(k))

    out = pl.pallas_call(
        kernel,
        out_shape=jax.ShapeDtypeStruct((m, out_p), x.dtype),
        grid_spec=pl.GridSpec(
            grid=(grid_m,),
            in_specs=[
                # NOTE: the (TM, lin) x tile is lane-sparse when lin < 128, but
                # x is only ~1/8 of total HBM traffic at these shapes.
                pl.BlockSpec((tm, lin), lambda i: (i, 0)),
                # VMEM-resident weight: constant block index, single buffer.
                pl.BlockSpec((out_p, lin), lambda i: (0, 0),
                             pipeline_mode=pl.Buffered(1)),
            ],
            out_specs=pl.BlockSpec((tm, out_p), lambda i: (i, 0)),
        ),
        compiler_params=pltpu.CompilerParams(
            dimension_semantics=("parallel",),     # megacore row split on v7x
            vmem_limit_bytes=vmem_limit),
        cost_estimate=pl.CostEstimate(
            flops=2 * m * lin * out_features,
            transcendentals=m,
            bytes_accessed=(x2.size * x2.dtype.itemsize
                            + w.size * w.dtype.itemsize
                            + m * out_p * x.dtype.itemsize)),
    )(x2, w)

    if out_p != out_features:
        out = out[:, :out_features]
    return out.reshape(*lead, out_features)


def _reference(x, weight, k=1.0):
    y = jnp.einsum("...i,oi->...o", x, weight)
    space = y[..., 1:]
    time = jnp.sqrt(k + jnp.sum(space * space, axis=-1, keepdims=True))
    return jnp.concatenate([time, space], axis=-1)


if __name__ == "__main__":
    # Small, module-consistent shapes (channels-last, group-stacked channels).
    batch, height, width = 2, 16, 16
    in_channels = 4
    input_stabilizer_size = 4
    lin_features = in_channels * input_stabilizer_size   # 16
    out_features = 32
    curvature_k = 1.0
    init_std = 0.02

    key = jax.random.PRNGKey(0)
    kx, kw = jax.random.split(key)

    # layout: (B, H, W, in_channels * input_stabilizer_size).
    x = jax.random.normal(kx, (batch, height, width, lin_features), dtype=jnp.float32)

    # weight ~ U(-init_std, init_std), matching nn.init.uniform_ in reset_parameters.
    weight = jax.random.uniform(
        kw, (out_features, lin_features), dtype=jnp.float32,
        minval=-init_std, maxval=init_std)

    # Auto TM: budget-derived, then capped so grid_m == 2 (M=512 -> TM=256),
    # exercising the megacore-friendly split.
    out = group_lorentz_linear(x, weight, k=curvature_k)
    out = jax.block_until_ready(out)

    ref = _reference(x, weight, k=curvature_k)
    assert out.shape == (batch, height, width, out_features)
    assert jnp.allclose(out, ref, atol=1e-5, rtol=1e-5)

    print("KERNEL_OK")
</pallas_src>

<mosaic_0001>
module attributes {stable_mosaic.version = 11 : i64} {
  func.func @_group_lorentz_linear_kernel(%arg0: i32, %arg1: memref<256x16xf32, #tpu.memory_space<vmem>>, %arg2: memref<128x16xf32, #tpu.memory_space<vmem>>, %arg3: memref<256x128xf32, #tpu.memory_space<vmem>>) attributes {dimension_semantics = [#tpu.dimension_semantics<parallel>], iteration_bounds = array<i64: 2>, scalar_prefetch = 0 : i64, scratch_operands = 0 : i64, tpu.core_type = #tpu.core_type<tc>, window_params = [{transform_indices = @transform_0, window_bounds = array<i64: 256, 16>}, {pipeline_mode = #tpu.pipeline_mode<synchronous>, transform_indices = @transform_1, window_bounds = array<i64: 128, 16>}, {transform_indices = @transform_2, window_bounds = array<i64: 256, 128>}]} {
    %c0 = arith.constant 0 : index
    %c0_0 = arith.constant 0 : index
    %0 = vector.load %arg1[%c0, %c0_0] : memref<256x16xf32, #tpu.memory_space<vmem>>, vector<256x16xf32>
    %c0_1 = arith.constant 0 : index
    %c0_2 = arith.constant 0 : index
    %1 = vector.load %arg2[%c0_1, %c0_2] : memref<128x16xf32, #tpu.memory_space<vmem>>, vector<128x16xf32>
    %cst = arith.constant dense<0.000000e+00> : vector<256x128xf32>
    %2 = tpu.matmul %0, %1, %cst {dimension_numbers = #tpu.dot_dimension_numbers<[1], [1], [0], [0], [0, 0, 1, 0], [], []>} : vector<256x16xf32>, vector<128x16xf32>, vector<256x128xf32> -> vector<256x128xf32>
    %3 = arith.mulf %2, %2 : vector<256x128xf32>
    %cst_3 = arith.constant dense<0.000000e+00> : vector<256xf32>
    %4 = vector.multi_reduction <add>, %3, %cst_3 [1] : vector<256x128xf32> to vector<256xf32>
    %5 = vector.shape_cast %4 : vector<256xf32> to vector<256x1xf32>
    %cst_4 = arith.constant 1.000000e+00 : f32
    %6 = vector.broadcast %cst_4 : f32 to vector<256x1xf32>
    %7 = arith.addf %6, %5 : vector<256x1xf32>
    %8 = math.sqrt %7 : vector<256x1xf32>
    %9 = tpu.iota {dimensions = array<i32: 1>} : vector<256x128xi32>
    %c0_i32 = arith.constant 0 : i32
    %10 = vector.broadcast %c0_i32 : i32 to vector<256x128xi32>
    %11 = arith.cmpi eq, %9, %10 : vector<256x128xi32>
    %12 = vector.shape_cast %8 : vector<256x1xf32> to vector<256x1xf32>
    %13 = vector.broadcast %12 : vector<256x1xf32> to vector<256x128xf32>
    %14 = arith.select %11, %13, %2 : vector<256x128xi1>, vector<256x128xf32>
    %c0_5 = arith.constant 0 : index
    %c0_6 = arith.constant 0 : index
    %15 = vector.load %arg3[%c0_5, %c0_6] : memref<256x128xf32, #tpu.memory_space<vmem>>, vector<256x128xf32>
    tpu.vector_store %arg3[%c0_5, %c0_6], %14 {strides = array<i32>} : memref<256x128xf32, #tpu.memory_space<vmem>>, vector<256x128xf32>,
    return
  }
  func.func @transform_0(%arg0: i32) -> (i32, i32) {
    %c0_i32 = arith.constant 0 : i32
    %c0_i32_0 = arith.constant 0 : i32
    return %arg0, %c0_i32 : i32, i32
  }
  func.func @transform_1(%arg0: i32) -> (i32, i32) {
    %c0_i32 = arith.constant 0 : i32
    %c0_i32_0 = arith.constant 0 : i32
    %c0_i32_1 = arith.constant 0 : i32
    return %c0_i32, %c0_i32_0 : i32, i32
  }
  func.func @transform_2(%arg0: i32) -> (i32, i32) {
    %c0_i32 = arith.constant 0 : i32
    %c0_i32_0 = arith.constant 0 : i32
    return %arg0, %c0_i32 : i32, i32
  }
}

</mosaic_0001>

<bundles_post_ra>
// kernel: tpu_custom_call.1
= control target key start
LH: loop header
LB: loop body
LE: loop exit
PB: predicated region body
PF: predicated region fallthrough
CT: control target
= control target key end

     0   :  { %7 = vsyncpa [#allocation3], 0  ;;  %s2291_s0 = inlined_call_operand.vmem [shape: f32[512,16], index: 0, kind: input, shape index: {}]   ;;  %s2292_s1 = inlined_call_operand.vmem [shape: f32[128,16], index: 1, kind: input, shape index: {}]   ;;  %s2293_s2 = inlined_call_operand.hbm [shape: f32[512,128], index: 2, kind: output, shape index: {}]  }
   0x1   :  { %9 = vsyncpa [#allocation3 + $0x1], 0  ;;  %s1403_s9 = smov 0   ;;  %s1405_s10 = smov 0  }
   0x2   :  { %s1407_s11 = smov 0   ;;  %s1409_s12 = smov 0  }
   0x3 LB: > { %s1424_s13 = sadd.s32 4294967295, %s1384_s12   ;;  %s1108_s14 = sadd.s32 4294967294, %s1384_s12   ;;  %s1384_s12 = sphi %s1409_s12, %s2299_s12   ;;  %s1380_s11 = sphi %s1407_s11, %s2298_s11   ;;  %s1376_s10 = sphi %s1405_s10, %s2297_s10   ;;  %s1372_s9 = sphi %s1403_s9, %s2296_s9  }
   0x4   : > { %s1428_s15 = sadd.s32 1, %s1384_s12   ;;  %s69_s16 = sadd.s32 1, %s1380_s11 }
   0x5   : > { %s66_s17 = ssub.s32 %s1384_s12, %s1428_s15  ;;  %p79_p0 = scmp.ne.s32.totalorder %s1380_s11, %s1376_s10 }
   0x6   : > { %p67_p1 = scmp.eq.s32.totalorder %s66_s17, 0  ;;  %p80_p2 = scmp.eq.s32.totalorder %s1424_s13, 1 }
   0x7   : > { %p85_p3 = scmp.ne.s32.totalorder %s1376_s10, %s1372_s9  ;;  %p86_p4 = scmp.eq.s32.totalorder %s1108_s14, 1 }
   0x8   : > { %s1439_s18 = scalar_select %p67_p1, %s1380_s11, %s69_s16  }
   0x9   : > { %p1441_p5 = por %p80_p2, %p79_p0  ;;  %p1445_p6 = por %p86_p4, %p85_p3 }
   0xa   : > { %p1111_p7 = scmp.ge.s32.totalorder %s1384_s12, 1  ;;  %p116_p8 = scmp.lt.s32.totalorder %s1384_s12, 3 }
   0xc   : > { %p117_p9 = pnand %p1111_p7, %p116_p8 }
   0xd   : > { %s1113_s26 = sshll.u32 (!%p117_p9), %s1424_s13, 5  ;;  %s135_s17 = sand.u32 (!%p117_p9), 1, %s1376_s10  }
   0xe   : > { %120 = sbr.rel (%p117_p9) target bundleno = 459 (0x1cb), region = 28  ;;  %p139_p10 = scmp.lt.s32.totalorder (!%p117_p9), %s1113_s26, 63 }
   0xf   : > { %s1112_s21 = sshll.u32 (!%p117_p9), %s135_s17, 8  ;;  %s1168_s23 = sshll.u32 (!%p117_p9), %s1424_s13, 8 }
  0x10   : > { %s1789_s22 = scalar_lea.vmem (!%p117_p9), [#allocation2], %s1112_s21  ;;  %s1042_s13 = scalar_lea.hbm (!%p117_p9), %s2293_s2, %s1168_s23 }
  0x11   : > { %s1045_s27 = sshll.u32 (!%p117_p9), %s1042_s13, 4  ;;  %s1031_s28 = scalar_lea.sflag (!%p117_p9), [#allocation3], %s135_s17  ;;  %s1046_s27 = int_to_ptr.hbm [resolvable:$true] %s1045_s27 }
  0x12   : > { %s1336_s29 = sshra.s32 (!%p117_p9), %s1046_s27, 4  ;;  %s1337_s29 = int_to_ptr.hbm [resolvable:$true] %s1336_s29 }
  0x13   : > { %v192_v0 = vld [vmem:[%s2292_s1 + $0x78] sm:$0xff]  ;;  %vm193_vm0 = vcmask 130048   ;;  %v191_v1 = vld [vmem:[%s2292_s1 + $0x70] sm:$0xff]  ;;  %v190_v2 = vld [vmem:[%s2292_s1 + $0x68] sm:$0xff]  ;;  %s2301_s26 = smov (!%p139_p10, %s1113_s26), 63  ;;  %s1338_s30 = scalar_lea.hbm %s1337_s29, 256 }
  0x14   : > { %1115 = vmatpush.xpose.msk.msra.mxu0 %vm193_vm0, %v192_v0  ;;  %1169 = vmatpush.xpose.msk.msra.mxu1 %vm193_vm0, %v192_v0  ;;  %v189_v3 = vld [vmem:[%s2292_s1 + $0x60] sm:$0xff]  ;;  %v188_v4 = vld [vmem:[%s2292_s1 + $0x58] sm:$0xff]  ;;  %v187_v5 = vld [vmem:[%s2292_s1 + $0x50] sm:$0xff]  ;;  %s1114_s5 = sshll.u32 %s2301_s26, 3  ;;  %s1043_s26 = sshll.u32 %s1789_s22, 4  ;;  %s1044_s26 = int_to_ptr.vmem [resolvable:$true] %s1043_s26 }
  0x15   : > { %1170 = vmatpush.xpose.msk.msra.mxu2 %vm193_vm0, %v192_v0  ;;  %1171 = vmatpush.xpose.msk.msra.mxu3 %vm193_vm0, %v192_v0  ;;  %v186_v6 = vld [vmem:[%s2292_s1 + $0x48] sm:$0xff]  ;;  %v185_v7 = vld [vmem:[%s2292_s1 + $0x40] sm:$0xff]  ;;  %v184_v8 = vld [vmem:[%s2292_s1 + $0x38] sm:$0xff]  ;;  %s1563_s16 = scalar_lea.vmem %s2291_s0, %s1114_s5  ;;  %p1339_p11 = scmp.ne.s32.totalorder %s1337_s29, %s1338_s30 }
  0x16   : > { %v183_v9 = vld [vmem:[%s2292_s1 + $0x30] sm:$0xff]  ;;  %v182_v10 = vld [vmem:[%s2292_s1 + $0x28] sm:$0xff]  ;;  %v181_v11 = vld [vmem:[%s2292_s1 + $0x20] sm:$0xff]  ;;  %s1342_s5 = scalar_lea.hbm %s2293_s2, 512  ;;  %p1343_p0 = scmp.lt.s32.totalorder %s1337_s29, %s2293_s2 }
  0x17   : > { %v180_v12 = vld [vmem:[%s2292_s1 + $0x18] sm:$0xff]  ;;  %v179_v13 = vld [vmem:[%s2292_s1 + $0x10] sm:$0xff]  ;;  %v178_v14 = vld [vmem:[%s2292_s1 + $0x8] sm:$0xff]  ;;  %p1340_p12 = pnand %p1339_p11, %p1441_p5  ;;  %p1344_p1 = scmp.lt.s32.totalorder %s1342_s5, %s1338_s30 }
  0x18   : > { %1116 = vmatpush.xpose.msk.msra.mxu0 %vm193_vm0, %v191_v1  ;;  %1172 = vmatpush.xpose.msk.msra.mxu1 %vm193_vm0, %v191_v1  ;;  %v177_v15 = vld [vmem:[%s2292_s1] sm:$0xff]  ;;  %v146_v20 = vld [vmem:[%s1563_s16 + $0x8] sm:$0xff]  ;;  %v147_v24 = vld [vmem:[%s1563_s16 + $0x10] sm:$0xff] }
  0x19   : > { %1173 = vmatpush.xpose.msk.msra.mxu2 %vm193_vm0, %v191_v1  ;;  %1174 = vmatpush.xpose.msk.msra.mxu3 %vm193_vm0, %v191_v1  ;;  %v145_v16 = vld [vmem:[%s1563_s16] sm:$0xff]  ;;  %v154_v21 = vld [vmem:[%s1563_s16 + $0x48] sm:$0xff]  ;;  %v155_v25 = vld [vmem:[%s1563_s16 + $0x50] sm:$0xff]  ;;  %p1341_p13 = pneg %p1340_p12  ;;  %p1345_p2 = por %p1344_p1, %p1343_p0 }
  0x1a   : > { %v153_v17 = vld [vmem:[%s1563_s16 + $0x40] sm:$0xff]  ;;  %v162_v22 = vld [vmem:[%s1563_s16 + $0x88] sm:$0xff]  ;;  %v171_v26 = vld [vmem:[%s1563_s16 + $0xd0] sm:$0xff] }
  0x1b   : > { %v161_v18 = vld [vmem:[%s1563_s16 + $0x80] sm:$0xff]  ;;  %v170_v23 = vld [vmem:[%s1563_s16 + $0xc8] sm:$0xff]  ;;  %v163_v27 = vld [vmem:[%s1563_s16 + $0x90] sm:$0xff]  ;;  %p1346_p3 = pnand %p1345_p2, %p1341_p13 }
  0x1c   : > { %1117 = vmatpush.xpose.msk.msra.mxu0 %vm193_vm0, %v190_v2  ;;  %1175 = vmatpush.xpose.msk.msra.mxu1 %vm193_vm0, %v190_v2  ;;  %v169_v19 = vld [vmem:[%s1563_s16 + $0xc0] sm:$0xff]  ;;  %v148_v28 = vld [vmem:[%s1563_s16 + $0x18] sm:$0xff]  ;;  %v150_v36 = vld [vmem:[%s1563_s16 + $0x28] sm:$0xff] }
  0x1d   : > { %1176 = vmatpush.xpose.msk.msra.mxu2 %vm193_vm0, %v190_v2  ;;  %1177 = vmatpush.xpose.msk.msra.mxu3 %vm193_vm0, %v190_v2  ;;  %v156_v29 = vld [vmem:[%s1563_s16 + $0x58] sm:$0xff]  ;;  %v149_v32 = vld [vmem:[%s1563_s16 + $0x20] sm:$0xff]  ;;  %v158_v37 = vld [vmem:[%s1563_s16 + $0x68] sm:$0xff] }
  0x1e   : > { %v164_v30 = vld [vmem:[%s1563_s16 + $0x98] sm:$0xff]  ;;  %v157_v33 = vld [vmem:[%s1563_s16 + $0x60] sm:$0xff]  ;;  %v166_v38 = vld [vmem:[%s1563_s16 + $0xa8] sm:$0xff] }
  0x1f   : > { %v172_v31 = vld [vmem:[%s1563_s16 + $0xd8] sm:$0xff]  ;;  %v165_v34 = vld [vmem:[%s1563_s16 + $0xa0] sm:$0xff]  ;;  %v174_v39 = vld [vmem:[%s1563_s16 + $0xe8] sm:$0xff] }
  0x20   : > { %1118 = vmatpush.xpose.msk.msra.mxu0 %vm193_vm0, %v189_v3  ;;  %1178 = vmatpush.xpose.msk.msra.mxu1 %vm193_vm0, %v189_v3  ;;  %v173_v35 = vld [vmem:[%s1563_s16 + $0xe0] sm:$0xff]  ;;  %v159_v40 = vld [vmem:[%s1563_s16 + $0x70] sm:$0xff]  ;;  %v160_v44 = vld [vmem:[%s1563_s16 + $0x78] sm:$0xff] }
  0x21   : > { %1179 = vmatpush.xpose.msk.msra.mxu2 %vm193_vm0, %v189_v3  ;;  %1180 = vmatpush.xpose.msk.msra.mxu3 %vm193_vm0, %v189_v3  ;;  %v151_v41 = vld [vmem:[%s1563_s16 + $0x30] sm:$0xff]  ;;  %v152_v45 = vld [vmem:[%s1563_s16 + $0x38] sm:$0xff] }
  0x22   : > { %v167_v42 = vld [vmem:[%s1563_s16 + $0xb0] sm:$0xff]  ;;  %v168_v46 = vld [vmem:[%s1563_s16 + $0xb8] sm:$0xff] }
  0x23   : > { %v175_v43 = vld [vmem:[%s1563_s16 + $0xf0] sm:$0xff]  ;;  %v176_v47 = vld [vmem:[%s1563_s16 + $0xf8] sm:$0xff] }
  0x24   : > { %1119 = vmatpush.xpose.msk.msra.mxu0 %vm193_vm0, %v188_v4  ;;  %1181 = vmatpush.xpose.msk.msra.mxu1 %vm193_vm0, %v188_v4 }
  0x25   : > { %1182 = vmatpush.xpose.msk.msra.mxu2 %vm193_vm0, %v188_v4  ;;  %1183 = vmatpush.xpose.msk.msra.mxu3 %vm193_vm0, %v188_v4 }
  0x28   : > { %1120 = vmatpush.xpose.msk.msra.mxu0 %vm193_vm0, %v187_v5  ;;  %1184 = vmatpush.xpose.msk.msra.mxu1 %vm193_vm0, %v187_v5 }
  0x29   : > { %1185 = vmatpush.xpose.msk.msra.mxu2 %vm193_vm0, %v187_v5  ;;  %1186 = vmatpush.xpose.msk.msra.mxu3 %vm193_vm0, %v187_v5 }
  0x2c   : > { %1121 = vmatpush.xpose.msk.msra.mxu0 %vm193_vm0, %v186_v6  ;;  %1187 = vmatpush.xpose.msk.msra.mxu1 %vm193_vm0, %v186_v6 }
  0x2d   : > { %1188 = vmatpush.xpose.msk.msra.mxu2 %vm193_vm0, %v186_v6  ;;  %1189 = vmatpush.xpose.msk.msra.mxu3 %vm193_vm0, %v186_v6 }
  0x30   : > { %1122 = vmatpush.xpose.msk.msra.mxu0 %vm193_vm0, %v185_v7  ;;  %1190 = vmatpush.xpose.msk.msra.mxu1 %vm193_vm0, %v185_v7 }
  0x31   : > { %1191 = vmatpush.xpose.msk.msra.mxu2 %vm193_vm0, %v185_v7  ;;  %1192 = vmatpush.xpose.msk.msra.mxu3 %vm193_vm0, %v185_v7 }
  0x34   : > { %1123 = vmatpush.xpose.msk.msra.mxu0 %vm193_vm0, %v184_v8  ;;  %1193 = vmatpush.xpose.msk.msra.mxu1 %vm193_vm0, %v184_v8 }
  0x35   : > { %1194 = vmatpush.xpose.msk.msra.mxu2 %vm193_vm0, %v184_v8  ;;  %1195 = vmatpush.xpose.msk.msra.mxu3 %vm193_vm0, %v184_v8 }
  0x38   : > { %1124 = vmatpush.xpose.msk.msra.mxu0 %vm193_vm0, %v183_v9  ;;  %1196 = vmatpush.xpose.msk.msra.mxu1 %vm193_vm0, %v183_v9 }
  0x39   : > { %1197 = vmatpush.xpose.msk.msra.mxu2 %vm193_vm0, %v183_v9  ;;  %1198 = vmatpush.xpose.msk.msra.mxu3 %vm193_vm0, %v183_v9 }
  0x3c   : > { %1125 = vmatpush.xpose.msk.msra.mxu0 %vm193_vm0, %v182_v10  ;;  %1199 = vmatpush.xpose.msk.msra.mxu1 %vm193_vm0, %v182_v10 }
  0x3d   : > { %1200 = vmatpush.xpose.msk.msra.mxu2 %vm193_vm0, %v182_v10  ;;  %1201 = vmatpush.xpose.msk.msra.mxu3 %vm193_vm0, %v182_v10 }
  0x40   : > { %1126 = vmatpush.xpose.msk.msra.mxu0 %vm193_vm0, %v181_v11  ;;  %1202 = vmatpush.xpose.msk.msra.mxu1 %vm193_vm0, %v181_v11 }
  0x41   : > { %1203 = vmatpush.xpose.msk.msra.mxu2 %vm193_vm0, %v181_v11  ;;  %1204 = vmatpush.xpose.msk.msra.mxu3 %vm193_vm0, %v181_v11 }
  0x44   : > { %1127 = vmatpush.xpose.msk.msra.mxu0 %vm193_vm0, %v180_v12  ;;  %1205 = vmatpush.xpose.msk.msra.mxu1 %vm193_vm0, %v180_v12 }
  0x45   : > { %1206 = vmatpush.xpose.msk.msra.mxu2 %vm193_vm0, %v180_v12  ;;  %1207 = vmatpush.xpose.msk.msra.mxu3 %vm193_vm0, %v180_v12 }
  0x48   : > { %1128 = vmatpush.xpose.msk.msra.mxu0 %vm193_vm0, %v179_v13  ;;  %1208 = vmatpush.xpose.msk.msra.mxu1 %vm193_vm0, %v179_v13 }
  0x49   : > { %1209 = vmatpush.xpose.msk.msra.mxu2 %vm193_vm0, %v179_v13  ;;  %1210 = vmatpush.xpose.msk.msra.mxu3 %vm193_vm0, %v179_v13 }
  0x4c   : > { %1129 = vmatpush.xpose.msk.msra.mxu0 %vm193_vm0, %v178_v14  ;;  %1211 = vmatpush.xpose.msk.msra.mxu1 %vm193_vm0, %v178_v14 }
  0x4d   : > { %1212 = vmatpush.xpose.msk.msra.mxu2 %vm193_vm0, %v178_v14  ;;  %1213 = vmatpush.xpose.msk.msra.mxu3 %vm193_vm0, %v178_v14 }
  0x50   : > { %1130 = vmatpush.xpose.msk.msra.mxu0 %vm193_vm0, %v177_v15  ;;  %1214 = vmatpush.xpose.msk.msra.mxu1 %vm193_vm0, %v177_v15 }
  0x51   : > { %1215 = vmatpush.xpose.msk.msra.mxu2 %vm193_vm0, %v177_v15  ;;  %1216 = vmatpush.xpose.msk.msra.mxu3 %vm193_vm0, %v177_v15 }
  0x53   : > { %1131 = vmatmul.msk.f32.vlgmr.msra.gmra.mxu0 %vm193_vm0, %v145_v16  ;;  %1139 = vmatmul.msk.f32.vlgmr.msra.gmra.mxu1 %vm193_vm0, %v153_v17 }
  0x54   : > { %1147 = vmatmul.msk.f32.vlgmr.msra.gmra.mxu2 %vm193_vm0, %v161_v18  ;;  %1155 = vmatmul.msk.f32.vlgmr.msra.gmra.mxu3 %vm193_vm0, %v169_v19 }
  0x5b   : > { %1132 = vmatmul.msk.f32.gmra.mxu0 %vm193_vm0, %v146_v20  ;;  %1140 = vmatmul.msk.f32.gmra.mxu1 %vm193_vm0, %v154_v21 }
  0x5c   : > { %1148 = vmatmul.msk.f32.gmra.mxu2 %vm193_vm0, %v162_v22  ;;  %1156 = vmatmul.msk.f32.gmra.mxu3 %vm193_vm0, %v170_v23 }
  0x63   : > { %1133 = vmatmul.msk.f32.gmra.mxu0 %vm193_vm0, %v147_v24  ;;  %1141 = vmatmul.msk.f32.gmra.mxu1 %vm193_vm0, %v155_v25 }
  0x64   : > { %1157 = vmatmul.msk.f32.gmra.mxu3 %vm193_vm0, %v171_v26  ;;  %1149 = vmatmul.msk.f32.gmra.mxu2 %vm193_vm0, %v163_v27 }
  0x6b   : > { %1134 = vmatmul.msk.f32.gmra.mxu0 %vm193_vm0, %v148_v28  ;;  %1142 = vmatmul.msk.f32.gmra.mxu1 %vm193_vm0, %v156_v29 }
  0x6c   : > { %1150 = vmatmul.msk.f32.gmra.mxu2 %vm193_vm0, %v164_v30  ;;  %1158 = vmatmul.msk.f32.gmra.mxu3 %vm193_vm0, %v172_v31 }
  0x73   : > { %1135 = vmatmul.msk.f32.gmra.mxu0 %vm193_vm0, %v149_v32  ;;  %1143 = vmatmul.msk.f32.gmra.mxu1 %vm193_vm0, %v157_v33 }
  0x74   : > { %1151 = vmatmul.msk.f32.gmra.mxu2 %vm193_vm0, %v165_v34  ;;  %1159 = vmatmul.msk.f32.gmra.mxu3 %vm193_vm0, %v173_v35 }
  0x7b   : > { %1136 = vmatmul.msk.f32.gmra.mxu0 %vm193_vm0, %v150_v36  ;;  %1144 = vmatmul.msk.f32.gmra.mxu1 %vm193_vm0, %v158_v37 }
  0x7c   : > { %1152 = vmatmul.msk.f32.gmra.mxu2 %vm193_vm0, %v166_v38  ;;  %1160 = vmatmul.msk.f32.gmra.mxu3 %vm193_vm0, %v174_v39 }
  0x83   : > { %1145 = vmatmul.msk.f32.gmra.mxu1 %vm193_vm0, %v159_v40  ;;  %1137 = vmatmul.msk.f32.gmra.mxu0 %vm193_vm0, %v151_v41 }
  0x84   : > { %1153 = vmatmul.msk.f32.gmra.mxu2 %vm193_vm0, %v167_v42  ;;  %1161 = vmatmul.msk.f32.gmra.mxu3 %vm193_vm0, %v175_v43 }
  0x8b   : > { %1146 = vmatmul.msk.f32.gmra.mxu1 %vm193_vm0, %v160_v44  ;;  %1138 = vmatmul.msk.f32.gmra.mxu0 %vm193_vm0, %v152_v45 }
  0x8c   : > { %1154 = vmatmul.msk.f32.gmra.mxu2 %vm193_vm0, %v168_v46  ;;  %1162 = vmatmul.msk.f32.gmra.mxu3 %vm193_vm0, %v176_v47 }
  0xd0   : > { %v1633_v48 = vpop.f32.mrf.mxu0  ;;  %v1635_v49 = vpop.f32.mrf.mxu1 }
  0xd1   : > { %v459_v50 = vmul.f32 %v1635_v49, %v1635_v49  ;;  %v451_v51 = vmul.f32 %v1633_v48, %v1633_v48 }
  0xd3   : > { %499 = vadd.xlane.f32.xlu2 %v459_v50  ;;  %483 = vadd.xlane.f32.xlu0 %v451_v51 }
  0xd7   : > { %v1641_v52 = vpop.f32.mrf.mxu2  ;;  %v1643_v53 = vpop.f32.mrf.mxu3 }
  0xd8   : > { %v467_v54 = vmul.f32 %v1641_v52, %v1641_v52  ;;  %v1647_v55 = vpop.f32.mrf.mxu0  ;;  %v1649_v56 = vpop.f32.mrf.mxu1  ;;  %v475_v57 = vmul.f32 %v1643_v53, %v1643_v53 }
  0xd9   : > { %v452_v63 = vmul.f32 %v1647_v55, %v1647_v55  ;;  %v460_v5 = vmul.f32 %v1649_v56, %v1649_v56 }
  0xda   : > { %515 = vadd.xlane.f32.xlu1 %v467_v54 }
  0xdb   : > { %531 = vadd.xlane.f32.xlu0 %v475_v57 }
  0xdf   : > { %v1653_v58 = vpop.f32.mrf.mxu2  ;;  %v1655_v59 = vpop.f32.mrf.mxu3 }
  0xe0   : > { %v476_v60 = vmul.f32 %v1655_v59, %v1655_v59  ;;  %v468_v61 = vmul.f32 %v1653_v58, %v1653_v58  ;;  %v1661_v62 = vpop.f32.mrf.mxu0  ;;  %v1665_v0 = vpop.f32.mrf.mxu1 }
  0xe1   : > { %v453_v1 = vmul.f32 %v1661_v62, %v1661_v62  ;;  %v461_v9 = vmul.f32 %v1665_v0, %v1665_v0 }
  0xe2   : > { %533 = vadd.xlane.f32.xlu1 %v476_v60  ;;  %517 = vadd.xlane.f32.xlu2 %v468_v61 }
  0xe3   : > { %485 = vadd.xlane.f32.xlu0 %v452_v63 }
  0xe7   : > { %v1669_v2 = vpop.f32.mrf.mxu3  ;;  %v1671_v3 = vpop.f32.mrf.mxu2 }
  0xe8   : > { %v477_v4 = vmul.f32 %v1669_v2, %v1669_v2  ;;  %v1677_v6 = vpop.f32.mrf.mxu0  ;;  %v1679_v7 = vpop.f32.mrf.mxu1  ;;  %v469_v10 = vmul.f32 %v1671_v3, %v1671_v3 }
  0xe9   : > { %v462_v8 = vmul.f32 %v1679_v7, %v1679_v7  ;;  %v454_v14 = vmul.f32 %v1677_v6, %v1677_v6 }
  0xea   : > { %535 = vadd.xlane.f32.xlu2 %v477_v4  ;;  %487 = vadd.xlane.f32.xlu1 %v453_v1  ;;  %v963_v4 = vlaneseq }
  0xeb   : > { %501 = vadd.xlane.f32.xlu0 %v460_v5 }
  0xef   : > { %v1687_v11 = vpop.f32.mrf.mxu2  ;;  %v1691_v13 = vpop.f32.mrf.mxu3 }
  0xf0   : > { %v1689_v12 = vpop.f32.mrf.mxu0  ;;  %v478_v16 = vmul.f32 %v1691_v13, %v1691_v13  ;;  %v1699_v17 = vpop.f32.mrf.mxu1  ;;  %v470_v19 = vmul.f32 %v1687_v11, %v1687_v11 }
  0xf1   : > { %v455_v15 = vmul.f32 %v1689_v12, %v1689_v12  ;;  %v463_v21 = vmul.f32 %v1699_v17, %v1699_v17 }
  0xf2   : > { %505 = vadd.xlane.f32.xlu2 %v462_v8  ;;  %503 = vadd.xlane.f32.xlu1 %v461_v9 }
  0xf3   : > { %519 = vadd.xlane.f32.xlu0 %v469_v10 }
  0xf7   : > { %v1701_v18 = vpop.f32.mrf.mxu2  ;;  %v1715_v25 = vpop.f32.mrf.mxu3 }
  0xf8   : > { %v471_v20 = vmul.f32 %v1701_v18, %v1701_v18  ;;  %v1711_v23 = vpop.f32.mrf.mxu1  ;;  %v1713_v24 = vpop.f32.mrf.mxu0  ;;  %v479_v26 = vmul.f32 %v1715_v25, %v1715_v25 }
  0xf9   : > { %v456_v27 = vmul.f32 %v1713_v24, %v1713_v24  ;;  %v464_v32 = vmul.f32 %v1711_v23, %v1711_v23 }
  0xfa   : > { %489 = vadd.xlane.f32.xlu1 %v454_v14  ;;  %491 = vadd.xlane.f32.xlu2 %v455_v15  ;;  %v1767_v15 = vand.u32 127, %v963_v4 }
  0xfb   : > { %537 = vadd.xlane.f32.xlu0 %v478_v16 }
  0xfc   : > { %vm965_vm1 = vcmp.eq.s32.totalorder %v1767_v15, 0 }
  0xff   : > { %v1709_v22 = vpop.f32.mrf.mxu2  ;;  %v1735_v35 = vpop.f32.mrf.mxu3 }
 0x100   : > { %v472_v28 = vmul.f32 %v1709_v22, %v1709_v22  ;;  %v1725_v30 = vpop.f32.mrf.mxu1  ;;  %v1727_v31 = vpop.f32.mrf.mxu0  ;;  %v480_v44 = vmul.f32 %v1735_v35, %v1735_v35 }
 0x101   : > { %v465_v33 = vmul.f32 %v1725_v30, %v1725_v30  ;;  %v457_v34 = vmul.f32 %v1727_v31, %v1727_v31 }
 0x102   : > { %521 = vadd.xlane.f32.xlu1 %v470_v19  ;;  %523 = vadd.xlane.f32.xlu2 %v471_v20 }
 0x103   : > { %507 = vadd.xlane.f32.xlu0 %v463_v21 }
 0x107   : > { %v1723_v29 = vpop.f32.mrf.mxu2  ;;  %v1747_v41 = vpop.f32.mrf.mxu3 }
 0x108   : > { %v1739_v37 = vpop.f32.mrf.mxu1  ;;  %v473_v39 = vmul.f32 %v1723_v29, %v1723_v29  ;;  %v1749_v42 = vpop.f32.mrf.mxu0  ;;  %v481_v45 = vmul.f32 %v1747_v41, %v1747_v41 }
 0x109   : > { %v466_v40 = vmul.f32 %v1739_v37, %v1739_v37  ;;  %v458_v43 = vmul.f32 %v1749_v42, %v1749_v42 }
 0x10a   : > { %539 = vadd.xlane.f32.xlu1 %v479_v26  ;;  %493 = vadd.xlane.f32.xlu2 %v456_v27 }
 0x10b   : > { %525 = vadd.xlane.f32.xlu0 %v472_v28 }
 0x10f   : > { %v1737_v36 = vpop.f32.mrf.mxu2  ;;  %v1757_v46 = vpop.f32.mrf.mxu3 }
 0x110   : > { %v474_v38 = vmul.f32 %v1737_v36, %v1737_v36  ;;  %v482_v47 = vmul.f32 %v1757_v46, %v1757_v46 }
 0x112   : > { %509 = vadd.xlane.f32.xlu1 %v464_v32  ;;  %511 = vadd.xlane.f32.xlu2 %v465_v33 }
 0x113   : > { %495 = vadd.xlane.f32.xlu0 %v457_v34 }
 0x11a   : > { %527 = vadd.xlane.f32.xlu1 %v473_v39  ;;  %529 = vadd.xlane.f32.xlu2 %v474_v38 }
 0x11b   : > { %513 = vadd.xlane.f32.xlu0 %v466_v40 }
 0x122   : > { %541 = vadd.xlane.f32.xlu2 %v480_v44  ;;  %497 = vadd.xlane.f32.xlu1 %v458_v43 }
 0x123   : > { %543 = vadd.xlane.f32.xlu0 %v481_v45 }
 0x12a   : > { %545 = vadd.xlane.f32.xlu1 %v482_v47 }
 0x146   : > { %v500_v50 = vpop.xlane.xlu2 %499  ;;  %v484_v51 = vpop.xlane.xlu0 %483 }
 0x147   : > { %v555_v54 = vadd.f32 1.0, %v500_v50  ;;  %v547_v57 = vadd.f32 1.0, %v484_v51 }
 0x149   : > { %1258 = vrsqrt.f32 %v555_v54  ;;  %vm682_vm2 = vcmp.eq.f32.partialorder %v555_v54, inf  ;;  %vm684_vm3 = vcmp.eq.f32.partialorder %v555_v54, 0.0  ;;  %vm586_vm4 = vcmp.eq.f32.partialorder %v547_v57, inf }
 0x14a   : > { %1260 = vrsqrt.f32 %v547_v57  ;;  %vm588_vm5 = vcmp.eq.f32.partialorder %v547_v57, 0.0 }
 0x14d   : > { %v516_v60 = vpop.xlane.xlu1 %515 }
 0x14e   : > { %v1761_v61 = vadd.f32 1.0, %v516_v60  ;;  %v532_v63 = vpop.xlane.xlu0 %531  ;;  %v685_v60 = vand.u32 2147483648, %v555_v54 }
 0x14f   : > { %v1259_v1 = vpop.eup %1258  ;;  %v1763_v5 = vadd.f32 1.0, %v532_v63 }
 0x150   : > { %v1261_v8 = vpop.eup %1260  ;;  %v676_v9 = vmul.f32 %v1259_v1, %v555_v54  ;;  %1262 = vrsqrt.f32 %v1761_v61  ;;  %vm778_vm6 = vcmp.eq.f32.partialorder %v1761_v61, inf  ;;  %vm780_vm7 = vcmp.eq.f32.partialorder %v1761_v61, 0.0 }
 0x151   : > { %v580_v10 = vmul.f32 %v1261_v8, %v547_v57  ;;  %1264 = vrsqrt.f32 %v1763_v5  ;;  %vm874_vm8 = vcmp.eq.f32.partialorder %v1763_v5, inf  ;;  %vm876_vm9 = vcmp.eq.f32.partialorder %v1763_v5, 0.0 }
 0x152   : > { %v677_v14 = vmul.f32 %v1259_v1, %v676_v9 }
 0x153   : > { %v581_v16 = vmul.f32 %v1261_v8, %v580_v10  ;;  %v589_v10 = vand.u32 2147483648, %v547_v57 }
 0x154   : > { %v678_v19 = vmul.f32 0.5, %v677_v14 }
 0x155   : > { %v582_v20 = vmul.f32 0.5, %v581_v16  ;;  %v534_v21 = vpop.xlane.xlu1 %533  ;;  %v518_v26 = vpop.xlane.xlu2 %517 }
 0x156   : > { %v1263_v27 = vpop.eup %1262  ;;  %v679_v28 = vsub.f32 1.5, %v678_v19  ;;  %v1770_v32 = vadd.f32 1.0, %v534_v21  ;;  %v1772_v33 = vadd.f32 1.0, %v518_v26  ;;  %v486_v34 = vpop.xlane.xlu0 %485 }
 0x157   : > { %v1265_v38 = vpop.eup %1264  ;;  %v583_v39 = vsub.f32 1.5, %v582_v20  ;;  %v772_v40 = vmul.f32 %v1263_v27, %v1761_v61  ;;  %v1778_v45 = vadd.f32 1.0, %v486_v34 }
 0x158   : > { %v680_v43 = vmul.f32 %v1259_v1, %v679_v28  ;;  %v868_v44 = vmul.f32 %v1265_v38, %v1763_v5  ;;  %1266 = vrsqrt.f32 %v1770_v32  ;;  %vm886_vm10 = vcmp.eq.f32.partialorder %v1770_v32, inf }
 0x159   : > { %v584_v47 = vmul.f32 %v1261_v8, %v583_v39  ;;  %v773_v50 = vmul.f32 %v1263_v27, %v772_v40  ;;  %1268 = vrsqrt.f32 %v1772_v33  ;;  %vm888_vm11 = vcmp.eq.f32.partialorder %v1770_v32, 0.0 }
 0x15a   : > { %v681_v51 = vmul.f32 %v680_v43, %v555_v54  ;;  %v869_v63 = vmul.f32 %v1265_v38, %v868_v44  ;;  %1270 = vrsqrt.f32 %v1778_v45  ;;  %vm790_vm12 = vcmp.eq.f32.partialorder %v1772_v33, inf }
 0x15b   : > { %v585_v4 = vmul.f32 %v584_v47, %v547_v57  ;;  %v774_v1 = vmul.f32 0.5, %v773_v50  ;;  %v781_v47 = vand.u32 2147483648, %v1761_v61  ;;  %vm792_vm13 = vcmp.eq.f32.partialorder %v1772_v33, 0.0 }
 0x15c   : > { %v683_v9 = vsel %vm682_vm2, %v555_v54, %v681_v51  ;;  %v870_v14 = vmul.f32 0.5, %v869_v63  ;;  %vm598_vm14 = vcmp.eq.f32.partialorder %v1778_v45, inf  ;;  %vm600_vm15 = vcmp.eq.f32.partialorder %v1778_v45, 0.0 }
 0x15d   : > { %v686_v16 = vsel %vm684_vm3, %v685_v60, %v683_v9  ;;  %v587_v19 = vsel %vm586_vm4, %v547_v57, %v585_v4  ;;  %v775_v20 = vsub.f32 1.5, %v774_v1  ;;  %v536_v8 = vpop.xlane.xlu2 %535  ;;  %v488_v21 = vpop.xlane.xlu1 %487  ;;  %v877_v1 = vand.u32 2147483648, %v1763_v5 }
 0x15e   : > { %v1267_v26 = vpop.eup %1266  ;;  %v974_v28 = vsel %vm965_vm1, %v686_v16, %v1635_v49  ;;  %v590_v34 = vsel %vm588_vm5, %v589_v10, %v587_v19  ;;  %v871_v54 = vsub.f32 1.5, %v870_v14  ;;  %v1796_v43 = vadd.f32 1.0, %v536_v8  ;;  %v502_v44 = vpop.xlane.xlu0 %501 }
 0x15f   : > { %1006 = vst [vmem:[%s1789_s22 + $0x40] sm:$0xff] %v974_v28  ;;  %v966_v57 = vsel %vm965_vm1, %v590_v34, %v1633_v48  ;;  %v776_v39 = vmul.f32 %v1263_v27, %v775_v20  ;;  %v880_v40 = vmul.f32 %v1267_v26, %v1770_v32  ;;  %v1269_v49 = vpop.eup %1268  ;;  %v1801_v51 = vadd.f32 1.0, %v488_v21 }
 0x160   : > { %998 = vst [vmem:[%s1789_s22] sm:$0xff] %v966_v57  ;;  %v872_v50 = vmul.f32 %v1265_v38, %v871_v54  ;;  %v784_v48 = vmul.f32 %v1269_v49, %v1772_v33  ;;  %1272 = vrsqrt.f32 %v1796_v43  ;;  %v1271_v27 = vpop.eup %1270  ;;  %v1809_v38 = vadd.f32 1.0, %v502_v44 }
 0x161   : > { %v777_v60 = vmul.f32 %v776_v39, %v1761_v61  ;;  %v881_v63 = vmul.f32 %v1267_v26, %v880_v40  ;;  %v592_v16 = vmul.f32 %v1271_v27, %v1778_v45  ;;  %1274 = vrsqrt.f32 %v1801_v51 }
 0x162   : > { %v873_v4 = vmul.f32 %v872_v50, %v1763_v5  ;;  %v785_v14 = vmul.f32 %v1269_v49, %v784_v48  ;;  %1276 = vrsqrt.f32 %v1809_v38  ;;  %vm898_vm0 = vcmp.eq.f32.partialorder %v1796_v43, inf }
 0x163   : > { %v779_v9 = vsel %vm778_vm6, %v1761_v61, %v777_v60  ;;  %v882_v10 = vmul.f32 0.5, %v881_v63  ;;  %v593_v54 = vmul.f32 %v1271_v27, %v592_v16  ;;  %vm900_vm2 = vcmp.eq.f32.partialorder %v1796_v43, 0.0 }
 0x164   : > { %v782_v19 = vsel %vm780_vm7, %v781_v47, %v779_v9  ;;  %v875_v20 = vsel %vm874_vm8, %v1763_v5, %v873_v4  ;;  %v786_v34 = vmul.f32 0.5, %v785_v14  ;;  %v889_v5 = vand.u32 2147483648, %v1770_v32 }
 0x165   : > { %v982_v8 = vsel %vm965_vm1, %v782_v19, %v1641_v52  ;;  %v878_v21 = vsel %vm876_vm9, %v877_v1, %v875_v20  ;;  %v883_v28 = vsub.f32 1.5, %v882_v10  ;;  %v506_v57 = vpop.xlane.xlu2 %505  ;;  %v504_v52 = vpop.xlane.xlu1 %503  ;;  %v793_v47 = vand.u32 2147483648, %v1772_v33 }
 0x166   : > { %1014 = vst [vmem:[%s1789_s22 + $0x80] sm:$0xff] %v982_v8  ;;  %v990_v61 = vsel %vm965_vm1, %v878_v21, %v1643_v53  ;;  %v1273_v39 = vpop.eup %1272  ;;  %v787_v44 = vsub.f32 1.5, %v786_v34  ;;  %v594_v53 = vmul.f32 0.5, %v593_v54  ;;  %v1839_v48 = vadd.f32 1.0, %v506_v57  ;;  %v520_v10 = vpop.xlane.xlu0 %519 }
 0x167   : > { %1022 = vst [vmem:[%s1789_s22 + $0xc0] sm:$0xff] %v990_v61  ;;  %v884_v40 = vmul.f32 %v1267_v26, %v883_v28  ;;  %v892_v50 = vmul.f32 %v1273_v39, %v1796_v43  ;;  %v1275_v26 = vpop.eup %1274  ;;  %v1842_v9 = vadd.f32 1.0, %v504_v52  ;;  %v601_v8 = vand.u32 2147483648, %v1778_v45 }
 0x168   : > { %v788_v63 = vmul.f32 %v1269_v49, %v787_v44  ;;  %v595_v4 = vsub.f32 1.5, %v594_v53  ;;  %v604_v49 = vmul.f32 %v1275_v26, %v1801_v51  ;;  %1278 = vrsqrt.f32 %v1839_v48  ;;  %v1277_v28 = vpop.eup %1276 }
 0x169   : > { %v885_v60 = vmul.f32 %v884_v40, %v1770_v32  ;;  %v893_v1 = vmul.f32 %v1273_v39, %v892_v50  ;;  %v688_v57 = vmul.f32 %v1277_v28, %v1809_v38  ;;  %1280 = vrsqrt.f32 %v1842_v9 }
 0x16a   : > { %v789_v16 = vmul.f32 %v788_v63, %v1772_v33  ;;  %v596_v20 = vmul.f32 %v1271_v27, %v595_v4  ;;  %v605_v54 = vmul.f32 %v1275_v26, %v604_v49  ;;  %v1869_v44 = vadd.f32 1.0, %v520_v10 }
 0x16b   : > { %v887_v14 = vsel %vm886_vm10, %v1770_v32, %v885_v60  ;;  %v894_v21 = vmul.f32 0.5, %v893_v1  ;;  %v901_v60 = vand.u32 2147483648, %v1796_v43  ;;  %vm610_vm3 = vcmp.eq.f32.partialorder %v1801_v51, inf }
 0x16c   : > { %v890_v19 = vsel %vm888_vm11, %v889_v5, %v887_v14  ;;  %v791_v61 = vsel %vm790_vm12, %v1772_v33, %v789_v16  ;;  %v597_v27 = vmul.f32 %v596_v20, %v1778_v45  ;;  %v606_v40 = vmul.f32 0.5, %v605_v54 }
 0x16d   : > { %v991_v34 = vsel %vm965_vm1, %v890_v19, %v1655_v59  ;;  %v794_v32 = vsel %vm792_vm13, %v793_v47, %v791_v61  ;;  %v895_v5 = vsub.f32 1.5, %v894_v21  ;;  %v689_v47 = vmul.f32 %v1277_v28, %v688_v57  ;;  %v492_v53 = vpop.xlane.xlu2 %491  ;;  %v490_v14 = vpop.xlane.xlu1 %489 }
 0x16e   : > { %1023 = vst [vmem:[%s1789_s22 + $0xc8] sm:$0xff] %v991_v34  ;;  %v983_v59 = vsel %vm965_vm1, %v794_v32, %v1653_v58  ;;  %v599_v33 = vsel %vm598_vm14, %v1778_v45, %v597_v27  ;;  %v1279_v50 = vpop.eup %1278  ;;  %v607_v63 = vsub.f32 1.5, %v606_v40  ;;  %vm612_vm4 = vcmp.eq.f32.partialorder %v1801_v51, 0.0  ;;  %v538_v20 = vpop.xlane.xlu0 %537 }
 0x16f   : > { %1015 = vst [vmem:[%s1789_s22 + $0x88] sm:$0xff] %v983_v59  ;;  %v896_v52 = vmul.f32 %v1273_v39, %v895_v5  ;;  %v602_v58 = vsel %vm600_vm15, %v601_v8, %v599_v33  ;;  %v690_v39 = vmul.f32 0.5, %v689_v47  ;;  %v712_v10 = vmul.f32 %v1279_v50, %v1839_v48  ;;  %v1281_v8 = vpop.eup %1280 }
 0x170   : > { %v967_v4 = vsel %vm965_vm1, %v602_v58, %v1647_v55  ;;  %v608_v16 = vmul.f32 %v1275_v26, %v607_v63  ;;  %v613_v45 = vand.u32 2147483648, %v1801_v51  ;;  %1282 = vrsqrt.f32 %v1869_v44 }
 0x171   : > { %v897_v1 = vmul.f32 %v896_v52, %v1796_v43  ;;  %999 = vst [vmem:[%s1789_s22 + $0x8] sm:$0xff] %v967_v4  ;;  %v691_v55 = vsub.f32 1.5, %v690_v39  ;;  %vm694_vm5 = vcmp.eq.f32.partialorder %v1809_v38, inf  ;;  %v713_v19 = vmul.f32 %v1279_v50, %v712_v10 }
 0x172   : > { %v609_v21 = vmul.f32 %v608_v16, %v1801_v51  ;;  %v1896_v34 = vadd.f32 1.0, %v490_v14  ;;  %v1898_v61 = vadd.f32 1.0, %v492_v53  ;;  %v700_v5 = vmul.f32 %v1281_v8, %v1842_v9 }
 0x173   : > { %v899_v49 = vsel %vm898_vm0, %v1796_v43, %v897_v1  ;;  %v692_v32 = vmul.f32 %v1277_v28, %v691_v55  ;;  %v714_v27 = vmul.f32 0.5, %v713_v19  ;;  %vm696_vm6 = vcmp.eq.f32.partialorder %v1809_v38, 0.0 }
 0x174   : > { %v902_v26 = vsel %vm900_vm2, %v901_v60, %v899_v49  ;;  %v611_v43 = vsel %vm610_vm3, %v1801_v51, %v609_v21  ;;  %v697_v57 = vand.u32 2147483648, %v1809_v38  ;;  %1284 = vrsqrt.f32 %v1896_v34 }
 0x175   : > { %v992_v54 = vsel %vm965_vm1, %v902_v26, %v1669_v2  ;;  %v614_v59 = vsel %vm612_vm4, %v613_v45, %v611_v43  ;;  %v693_v2 = vmul.f32 %v692_v32, %v1809_v38  ;;  %v715_v28 = vsub.f32 1.5, %v714_v27  ;;  %v524_v60 = vpop.xlane.xlu2 %523  ;;  %v522_v14 = vpop.xlane.xlu1 %521 }
 0x176   : > { %1024 = vst [vmem:[%s1789_s22 + $0xd0] sm:$0xff] %v992_v54  ;;  %v701_v40 = vmul.f32 %v1281_v8, %v700_v5  ;;  %v1283_v33 = vpop.eup %1282  ;;  %v968_v52 = vsel %vm965_vm1, %v614_v59, %v1661_v62  ;;  %vm718_vm7 = vcmp.eq.f32.partialorder %v1839_v48, inf  ;;  %vm720_vm8 = vcmp.eq.f32.partialorder %v1839_v48, 0.0  ;;  %v508_v19 = vpop.xlane.xlu0 %507 }
 0x177   : > { %1286 = vrsqrt.f32 %v1898_v61  ;;  %1000 = vst [vmem:[%s1789_s22 + $0x10] sm:$0xff] %v968_v52  ;;  %v695_v51 = vsel %vm694_vm5, %v1809_v38, %v693_v2  ;;  %v716_v47 = vmul.f32 %v1279_v50, %v715_v28  ;;  %v796_v58 = vmul.f32 %v1283_v33, %v1869_v44 }
 0x178   : > { %v702_v53 = vmul.f32 0.5, %v701_v40  ;;  %v698_v62 = vsel %vm696_vm6, %v697_v57, %v695_v51  ;;  %v721_v63 = vand.u32 2147483648, %v1839_v48  ;;  %vm706_vm9 = vcmp.eq.f32.partialorder %v1842_v9, inf }
 0x179   : > { %v1929_v4 = vadd.f32 1.0, %v538_v20  ;;  %v975_v1 = vsel %vm965_vm1, %v698_v62, %v1649_v56  ;;  %v717_v39 = vmul.f32 %v716_v47, %v1839_v48  ;;  %v797_v10 = vmul.f32 %v1283_v33, %v796_v58 }
 0x17a   : > { %v703_v50 = vsub.f32 1.5, %v702_v53  ;;  %v1285_v16 = vpop.eup %1284  ;;  %1007 = vst [vmem:[%s1789_s22 + $0x48] sm:$0xff] %v975_v1  ;;  %vm708_vm10 = vcmp.eq.f32.partialorder %v1842_v9, 0.0  ;;  %v709_v38 = vand.u32 2147483648, %v1842_v9  ;;  %vm802_vm11 = vcmp.eq.f32.partialorder %v1869_v44, inf }
 0x17b   : > { %1288 = vrsqrt.f32 %v1929_v4  ;;  %v719_v56 = vsel %vm718_vm7, %v1839_v48, %v717_v39  ;;  %v798_v49 = vmul.f32 0.5, %v797_v10  ;;  %v616_v55 = vmul.f32 %v1285_v16, %v1896_v34 }
 0x17c   : > { %v704_v45 = vmul.f32 %v1281_v8, %v703_v50  ;;  %v722_v26 = vsel %vm720_vm8, %v721_v63, %v719_v56  ;;  %vm804_vm12 = vcmp.eq.f32.partialorder %v1869_v44, 0.0  ;;  %v1947_v21 = vadd.f32 1.0, %v522_v14 }
 0x17d   : > { %v1287_v20 = vpop.eup %1286  ;;  %v1949_v54 = vadd.f32 1.0, %v524_v60  ;;  %v977_v32 = vsel %vm965_vm1, %v722_v26, %v1679_v7  ;;  %v799_v27 = vsub.f32 1.5, %v798_v49  ;;  %v617_v5 = vmul.f32 %v1285_v16, %v616_v55  ;;  %v494_v58 = vpop.xlane.xlu2 %493 }
 0x17e   : > { %v705_v8 = vmul.f32 %v704_v45, %v1842_v9  ;;  %1009 = vst [vmem:[%s1789_s22 + $0x58] sm:$0xff] %v977_v32  ;;  %v805_v43 = vand.u32 2147483648, %v1869_v44  ;;  %v628_v48 = vmul.f32 %v1287_v20, %v1898_v61  ;;  %1290 = vrsqrt.f32 %v1947_v21  ;;  %v540_v1 = vpop.xlane.xlu1 %539 }
 0x17f   : > { %v1959_v57 = vadd.f32 1.0, %v508_v19  ;;  %v800_v2 = vmul.f32 %v1283_v33, %v799_v27  ;;  %v618_v7 = vmul.f32 0.5, %v617_v5  ;;  %vm622_vm13 = vcmp.eq.f32.partialorder %v1896_v34, inf  ;;  %v526_v27 = vpop.xlane.xlu0 %525 }
 0x180   : > { %v707_v59 = vsel %vm706_vm9, %v1842_v9, %v705_v8  ;;  %vm624_vm14 = vcmp.eq.f32.partialorder %v1896_v34, 0.0  ;;  %v629_v52 = vmul.f32 %v1287_v20, %v628_v48  ;;  %1292 = vrsqrt.f32 %v1949_v54 }
 0x181   : > { %v1289_v28 = vpop.eup %1288  ;;  %v710_v40 = vsel %vm708_vm10, %v709_v38, %v707_v59  ;;  %v801_v47 = vmul.f32 %v800_v2, %v1869_v44  ;;  %v619_v53 = vsub.f32 1.5, %v618_v7  ;;  %v625_v60 = vand.u32 2147483648, %v1896_v34 }
 0x182   : > { %v976_v51 = vsel %vm965_vm1, %v710_v40, %v1665_v0  ;;  %v904_v33 = vmul.f32 %v1289_v28, %v1929_v4  ;;  %v630_v9 = vmul.f32 0.5, %v629_v52  ;;  %vm634_vm15 = vcmp.eq.f32.partialorder %v1898_v61, inf }
 0x183   : > { %1008 = vst [vmem:[%s1789_s22 + $0x50] sm:$0xff] %v976_v51  ;;  %1294 = vrsqrt.f32 %v1959_v57  ;;  %v803_v62 = vsel %vm802_vm11, %v1869_v44, %v801_v47  ;;  %v620_v0 = vmul.f32 %v1285_v16, %v619_v53  ;;  %vm636_vm0 = vcmp.eq.f32.partialorder %v1898_v61, 0.0 }
 0x184   : > { %v905_v63 = vmul.f32 %v1289_v28, %v904_v33  ;;  %v1291_v39 = vpop.eup %1290  ;;  %v806_v50 = vsel %vm804_vm12, %v805_v43, %v803_v62  ;;  %v631_v10 = vsub.f32 1.5, %v630_v9  ;;  %v637_v14 = vand.u32 2147483648, %v1898_v61 }
 0x185   : > { %vm910_vm2 = vcmp.eq.f32.partialorder %v1929_v4, inf  ;;  %v984_v38 = vsel %vm965_vm1, %v806_v50, %v1671_v3  ;;  %v621_v56 = vmul.f32 %v620_v0, %v1896_v34  ;;  %v808_v45 = vmul.f32 %v1291_v39, %v1947_v21  ;;  %v512_v33 = vpop.xlane.xlu2 %511 }
 0x186   : > { %v906_v16 = vmul.f32 0.5, %v905_v63  ;;  %v1293_v49 = vpop.eup %1292  ;;  %1016 = vst [vmem:[%s1789_s22 + $0x90] sm:$0xff] %v984_v38  ;;  %v632_v55 = vmul.f32 %v1287_v20, %v631_v10  ;;  %vm912_vm3 = vcmp.eq.f32.partialorder %v1929_v4, 0.0  ;;  %v913_v44 = vand.u32 2147483648, %v1929_v4  ;;  %v510_v63 = vpop.xlane.xlu1 %509 }
 0x187   : > { %v1994_v19 = vadd.f32 1.0, %v540_v1  ;;  %v623_v26 = vsel %vm622_vm13, %v1896_v34, %v621_v56  ;;  %v809_v32 = vmul.f32 %v1291_v39, %v808_v45  ;;  %v820_v8 = vmul.f32 %v1293_v49, %v1949_v54 }
 0x188   : > { %v907_v3 = vsub.f32 1.5, %v906_v16  ;;  %v626_v20 = vsel %vm624_vm14, %v625_v60, %v623_v26  ;;  %v633_v43 = vmul.f32 %v632_v55, %v1898_v61  ;;  %v2004_v48 = vadd.f32 1.0, %v494_v58 }
 0x189   : > { %v1295_v5 = vpop.eup %1294  ;;  %1296 = vrsqrt.f32 %v1994_v19  ;;  %v969_v59 = vsel %vm965_vm1, %v626_v20, %v1677_v6  ;;  %v810_v7 = vmul.f32 0.5, %v809_v32  ;;  %v821_v40 = vmul.f32 %v1293_v49, %v820_v8 }
 0x18a   : > { %v908_v2 = vmul.f32 %v1289_v28, %v907_v3  ;;  %1001 = vst [vmem:[%s1789_s22 + $0x18] sm:$0xff] %v969_v59  ;;  %v635_v34 = vsel %vm634_vm15, %v1898_v61, %v633_v43  ;;  %vm814_vm4 = vcmp.eq.f32.partialorder %v1947_v21, inf  ;;  %v724_v52 = vmul.f32 %v1295_v5, %v1959_v57 }
 0x18b   : > { %v2015_v51 = vadd.f32 1.0, %v526_v27  ;;  %v638_v47 = vsel %vm636_vm0, %v637_v14, %v635_v34  ;;  %v811_v28 = vsub.f32 1.5, %v810_v7  ;;  %v822_v53 = vmul.f32 0.5, %v821_v40 }
 0x18c   : > { %v909_v6 = vmul.f32 %v908_v2, %v1929_v4  ;;  %v970_v58 = vsel %vm965_vm1, %v638_v47, %v1689_v12  ;;  %vm816_vm5 = vcmp.eq.f32.partialorder %v1947_v21, 0.0  ;;  %v725_v60 = vmul.f32 %v1295_v5, %v724_v52 }
 0x18d   : > { %1298 = vrsqrt.f32 %v2004_v48  ;;  %1002 = vst [vmem:[%s1789_s22 + $0x20] sm:$0xff] %v970_v58  ;;  %v812_v9 = vmul.f32 %v1291_v39, %v811_v28  ;;  %v817_v62 = vand.u32 2147483648, %v1947_v21  ;;  %v823_v0 = vsub.f32 1.5, %v822_v53  ;;  %v530_v47 = vpop.xlane.xlu2 %529 }
 0x18e   : > { %v911_v61 = vsel %vm910_vm2, %v1929_v4, %v909_v6  ;;  %vm826_vm6 = vcmp.eq.f32.partialorder %v1949_v54, inf  ;;  %v726_v50 = vmul.f32 0.5, %v725_v60  ;;  %1300 = vrsqrt.f32 %v2015_v51 }
 0x18f   : > { %v1297_v1 = vpop.eup %1296  ;;  %v914_v12 = vsel %vm912_vm3, %v913_v44, %v911_v61  ;;  %v813_v14 = vmul.f32 %v812_v9, %v1947_v21  ;;  %v824_v39 = vmul.f32 %v1293_v49, %v823_v0  ;;  %vm828_vm7 = vcmp.eq.f32.partialorder %v1949_v54, 0.0  ;;  %v496_v49 = vpop.xlane.xlu0 %495 }
 0x190   : > { %v993_v10 = vsel %vm965_vm1, %v914_v12, %v1691_v13  ;;  %v916_v38 = vmul.f32 %v1297_v1, %v1994_v19  ;;  %v829_v4 = vand.u32 2147483648, %v1949_v54  ;;  %v727_v56 = vsub.f32 1.5, %v726_v50 }
 0x191   : > { %1025 = vst [vmem:[%s1789_s22 + $0xd8] sm:$0xff] %v993_v10  ;;  %vm730_vm8 = vcmp.eq.f32.partialorder %v1959_v57, inf  ;;  %v815_v16 = vsel %vm814_vm4, %v1947_v21, %v813_v14  ;;  %v825_v13 = vmul.f32 %v824_v39, %v1949_v54  ;;  %v2047_v55 = vadd.f32 1.0, %v510_v63 }
 0x192   : > { %v917_v45 = vmul.f32 %v1297_v1, %v916_v38  ;;  %v818_v26 = vsel %vm816_vm5, %v817_v62, %v815_v16  ;;  %v728_v3 = vmul.f32 %v1295_v5, %v727_v56  ;;  %v733_v32 = vand.u32 2147483648, %v1959_v57 }
 0x193   : > { %v1299_v44 = vpop.eup %1298  ;;  %v2052_v8 = vadd.f32 1.0, %v512_v33  ;;  %v985_v27 = vsel %vm965_vm1, %v818_v26, %v1687_v11  ;;  %v827_v20 = vsel %vm826_vm6, %v1949_v54, %v825_v13  ;;  %1302 = vrsqrt.f32 %v2047_v55 }
 0x194   : > { %v918_v43 = vmul.f32 0.5, %v917_v45  ;;  %v640_v59 = vmul.f32 %v1299_v44, %v2004_v48  ;;  %v1301_v2 = vpop.eup %1300  ;;  %1017 = vst [vmem:[%s1789_s22 + $0x98] sm:$0xff] %v985_v27  ;;  %v830_v21 = vsel %vm828_vm7, %v829_v4, %v827_v20  ;;  %v729_v5 = vmul.f32 %v728_v3, %v1959_v57 }
 0x195   : > { %v2066_v7 = vadd.f32 1.0, %v496_v49  ;;  %v986_v11 = vsel %vm965_vm1, %v830_v21, %v1701_v18  ;;  %v832_v52 = vmul.f32 %v1301_v2, %v2015_v51  ;;  %vm732_vm9 = vcmp.eq.f32.partialorder %v1959_v57, 0.0  ;;  %v528_v18 = vpop.xlane.xlu1 %527 }
 0x196   : > { %v919_v40 = vsub.f32 1.5, %v918_v43  ;;  %v641_v34 = vmul.f32 %v1299_v44, %v640_v59  ;;  %1018 = vst [vmem:[%s1789_s22 + $0xa0] sm:$0xff] %v986_v11  ;;  %v731_v54 = vsel %vm730_vm8, %v1959_v57, %v729_v5  ;;  %1304 = vrsqrt.f32 %v2052_v8 }
 0x197   : > { %v734_v6 = vsel %vm732_vm9, %v733_v32, %v731_v54  ;;  %v833_v33 = vmul.f32 %v1301_v2, %v832_v52  ;;  %vm922_vm10 = vcmp.eq.f32.partialorder %v1994_v19, inf  ;;  %vm924_vm11 = vcmp.eq.f32.partialorder %v1994_v19, 0.0  ;;  %v514_v39 = vpop.xlane.xlu0 %513  ;;  %v542_v32 = vpop.xlane.xlu2 %541 }
 0x198   : > { %v920_v28 = vmul.f32 %v1297_v1, %v919_v40  ;;  %v642_v53 = vmul.f32 0.5, %v641_v34  ;;  %v978_v58 = vsel %vm965_vm1, %v734_v6, %v1699_v17  ;;  %v925_v60 = vand.u32 2147483648, %v1994_v19 }
 0x199   : > { %1010 = vst [vmem:[%s1789_s22 + $0x60] sm:$0xff] %v978_v58  ;;  %v834_v9 = vmul.f32 0.5, %v833_v33  ;;  %1306 = vrsqrt.f32 %v2066_v7  ;;  %v1303_v62 = vpop.eup %1302  ;;  %vm646_vm12 = vcmp.eq.f32.partialorder %v2004_v48, inf  ;;  %vm648_vm13 = vcmp.eq.f32.partialorder %v2004_v48, 0.0 }
 0x19a   : > { %v921_v57 = vmul.f32 %v920_v28, %v1994_v19  ;;  %v643_v61 = vsub.f32 1.5, %v642_v53  ;;  %v649_v17 = vand.u32 2147483648, %v2004_v48  ;;  %v2090_v0 = vadd.f32 1.0, %v528_v18 }
 0x19b   : > { %v835_v12 = vsub.f32 1.5, %v834_v9  ;;  %v736_v50 = vmul.f32 %v1303_v62, %v2047_v55  ;;  %vm838_vm14 = vcmp.eq.f32.partialorder %v2015_v51, inf  ;;  %vm840_vm15 = vcmp.eq.f32.partialorder %v2015_v51, 0.0 }
 0x19c   : > { %v923_v63 = vsel %vm922_vm10, %v1994_v19, %v921_v57  ;;  %v644_v1 = vmul.f32 %v1299_v44, %v643_v61  ;;  %v1305_v10 = vpop.eup %1304  ;;  %1308 = vrsqrt.f32 %v2090_v0  ;;  %v841_v13 = vand.u32 2147483648, %v2015_v51 }
 0x19d   : > { %v926_v14 = vsel %vm924_vm11, %v925_v60, %v923_v63  ;;  %v836_v56 = vmul.f32 %v1301_v2, %v835_v12  ;;  %v737_v16 = vmul.f32 %v1303_v62, %v736_v50  ;;  %vm742_vm0 = vcmp.eq.f32.partialorder %v2047_v55, inf  ;;  %v498_v5 = vpop.xlane.xlu1 %497 }
 0x19e   : > { %v994_v38 = vsel %vm965_vm1, %v926_v14, %v1715_v25  ;;  %v645_v4 = vmul.f32 %v644_v1, %v2004_v48  ;;  %v748_v19 = vmul.f32 %v1305_v10, %v2052_v8  ;;  %v2107_v45 = vadd.f32 1.0, %v530_v47 }
 0x19f   : > { %1026 = vst [vmem:[%s1789_s22 + $0xe0] sm:$0xff] %v994_v38  ;;  %v1307_v49 = vpop.eup %1306  ;;  %v837_v25 = vmul.f32 %v836_v56, %v2015_v51  ;;  %v738_v26 = vmul.f32 0.5, %v737_v16  ;;  %v2113_v3 = vadd.f32 1.0, %v514_v39  ;;  %vm744_vm2 = vcmp.eq.f32.partialorder %v2047_v55, 0.0 }
 0x1a0   : > { %v647_v44 = vsel %vm646_vm12, %v2004_v48, %v645_v4  ;;  %v749_v20 = vmul.f32 %v1305_v10, %v748_v19  ;;  %v652_v43 = vmul.f32 %v1307_v49, %v2066_v7  ;;  %1310 = vrsqrt.f32 %v2107_v45 }
 0x1a1   : > { %v650_v27 = vsel %vm648_vm13, %v649_v17, %v647_v44  ;;  %v839_v2 = vsel %vm838_vm14, %v2015_v51, %v837_v25  ;;  %v739_v21 = vsub.f32 1.5, %v738_v26  ;;  %v2129_v52 = vadd.f32 1.0, %v542_v32 }
 0x1a2   : > { %v971_v59 = vsel %vm965_vm1, %v650_v27, %v1713_v24  ;;  %v1309_v48 = vpop.eup %1308  ;;  %v842_v11 = vsel %vm840_vm15, %v841_v13, %v839_v2  ;;  %v750_v40 = vmul.f32 0.5, %v749_v20  ;;  %v653_v34 = vmul.f32 %v1307_v49, %v652_v43 }
 0x1a3   : > { %1003 = vst [vmem:[%s1789_s22 + $0x28] sm:$0xff] %v971_v59  ;;  %v987_v24 = vsel %vm965_vm1, %v842_v11, %v1709_v22  ;;  %v740_v47 = vmul.f32 %v1303_v62, %v739_v21  ;;  %v745_v54 = vand.u32 2147483648, %v2047_v55  ;;  %v844_v6 = vmul.f32 %v1309_v48, %v2090_v0  ;;  %v544_v62 = vpop.xlane.xlu0 %543 }
 0x1a4   : > { %1019 = vst [vmem:[%s1789_s22 + $0xa8] sm:$0xff] %v987_v24  ;;  %v751_v28 = vsub.f32 1.5, %v750_v40  ;;  %vm754_vm3 = vcmp.eq.f32.partialorder %v2052_v8, inf  ;;  %v654_v53 = vmul.f32 0.5, %v653_v34  ;;  %1312 = vrsqrt.f32 %v2113_v3 }
 0x1a5   : > { %v741_v51 = vmul.f32 %v740_v47, %v2047_v55  ;;  %vm756_vm4 = vcmp.eq.f32.partialorder %v2052_v8, 0.0  ;;  %v757_v33 = vand.u32 2147483648, %v2052_v8  ;;  %v845_v18 = vmul.f32 %v1309_v48, %v844_v6 }
 0x1a6   : > { %v1311_v22 = vpop.eup %1310  ;;  %v752_v58 = vmul.f32 %v1305_v10, %v751_v28  ;;  %v655_v60 = vsub.f32 1.5, %v654_v53  ;;  %vm658_vm5 = vcmp.eq.f32.partialorder %v2066_v7, inf  ;;  %1314 = vrsqrt.f32 %v2129_v52 }
 0x1a7   : > { %v743_v57 = vsel %vm742_vm0, %v2047_v55, %v741_v51  ;;  %vm660_vm6 = vcmp.eq.f32.partialorder %v2066_v7, 0.0  ;;  %v846_v61 = vmul.f32 0.5, %v845_v18  ;;  %v856_v9 = vmul.f32 %v1311_v22, %v2107_v45 }
 0x1a8   : > { %v746_v17 = vsel %vm744_vm2, %v745_v54, %v743_v57  ;;  %v753_v63 = vmul.f32 %v752_v58, %v2052_v8  ;;  %v656_v1 = vmul.f32 %v1307_v49, %v655_v60  ;;  %v661_v12 = vand.u32 2147483648, %v2066_v7  ;;  %v546_v49 = vpop.xlane.xlu1 %545 }
 0x1a9   : > { %v979_v50 = vsel %vm965_vm1, %v746_v17, %v1711_v23  ;;  %v847_v10 = vsub.f32 1.5, %v846_v61  ;;  %v857_v14 = vmul.f32 %v1311_v22, %v856_v9  ;;  %v2156_v39 = vadd.f32 1.0, %v498_v5 }
 0x1aa   : > { %v1313_v38 = vpop.eup %1312  ;;  %1011 = vst [vmem:[%s1789_s22 + $0x68] sm:$0xff] %v979_v50  ;;  %v755_v55 = vsel %vm754_vm3, %v2052_v8, %v753_v63  ;;  %v657_v4 = vmul.f32 %v656_v1, %v2066_v7  ;;  %vm850_vm7 = vcmp.eq.f32.partialorder %v2090_v0, inf  ;;  %v2164_v56 = vadd.f32 1.0, %v544_v62 }
 0x1ab   : > { %v758_v23 = vsel %vm756_vm4, %v757_v33, %v755_v55  ;;  %v848_v16 = vmul.f32 %v1309_v48, %v847_v10  ;;  %v858_v13 = vmul.f32 0.5, %v857_v14  ;;  %v760_v19 = vmul.f32 %v1313_v38, %v2113_v3 }
 0x1ac   : > { %v1315_v44 = vpop.eup %1314  ;;  %v980_v25 = vsel %vm965_vm1, %v758_v23, %v1725_v30  ;;  %v659_v26 = vsel %vm658_vm5, %v2066_v7, %v657_v4  ;;  %vm852_vm8 = vcmp.eq.f32.partialorder %v2090_v0, 0.0  ;;  %1316 = vrsqrt.f32 %v2156_v39 }
 0x1ad   : > { %1012 = vst [vmem:[%s1789_s22 + $0x70] sm:$0xff] %v980_v25  ;;  %v662_v8 = vsel %vm660_vm6, %v661_v12, %v659_v26  ;;  %v849_v32 = vmul.f32 %v848_v16, %v2090_v0  ;;  %v859_v27 = vsub.f32 1.5, %v858_v13  ;;  %v761_v20 = vmul.f32 %v1313_v38, %v760_v19 }
 0x1ae   : > { %v972_v30 = vsel %vm965_vm1, %v662_v8, %v1727_v31  ;;  %v853_v43 = vand.u32 2147483648, %v2090_v0  ;;  %v928_v59 = vmul.f32 %v1315_v44, %v2129_v52  ;;  %v2186_v2 = vadd.f32 1.0, %v546_v49 }
 0x1af   : > { %1004 = vst [vmem:[%s1789_s22 + $0x30] sm:$0xff] %v972_v30  ;;  %v851_v7 = vsel %vm850_vm7, %v2090_v0, %v849_v32  ;;  %v860_v21 = vmul.f32 %v1311_v22, %v859_v27  ;;  %v762_v5 = vmul.f32 0.5, %v761_v20  ;;  %1318 = vrsqrt.f32 %v2164_v56 }
 0x1b0   : > { %v854_v48 = vsel %vm852_vm8, %v853_v43, %v851_v7  ;;  %v929_v11 = vmul.f32 %v1315_v44, %v928_v59  ;;  %vm862_vm9 = vcmp.eq.f32.partialorder %v2107_v45, inf  ;;  %v865_v47 = vand.u32 2147483648, %v2107_v45 }
 0x1b1   : > { %v988_v31 = vsel %vm965_vm1, %v854_v48, %v1723_v29  ;;  %v861_v40 = vmul.f32 %v860_v21, %v2107_v45  ;;  %v763_v34 = vsub.f32 1.5, %v762_v5  ;;  %1320 = vrsqrt.f32 %v2186_v2 }
 0x1b2   : > { %v1317_v24 = vpop.eup %1316  ;;  %1020 = vst [vmem:[%s1789_s22 + $0xb0] sm:$0xff] %v988_v31  ;;  %v930_v54 = vmul.f32 0.5, %v929_v11  ;;  %vm864_vm10 = vcmp.eq.f32.partialorder %v2107_v45, 0.0  ;;  %vm766_vm11 = vcmp.eq.f32.partialorder %v2113_v3, inf  ;;  %v769_v58 = vand.u32 2147483648, %v2113_v3 }
 0x1b3   : > { %v863_v0 = vsel %vm862_vm9, %v2107_v45, %v861_v40  ;;  %v764_v6 = vmul.f32 %v1313_v38, %v763_v34  ;;  %v664_v29 = vmul.f32 %v1317_v24, %v2156_v39  ;;  %vm768_vm12 = vcmp.eq.f32.partialorder %v2113_v3, 0.0 }
 0x1b4   : > { %v866_v28 = vsel %vm864_vm10, %v865_v47, %v863_v0  ;;  %v931_v53 = vsub.f32 1.5, %v930_v54  ;;  %vm934_vm13 = vcmp.eq.f32.partialorder %v2129_v52, inf  ;;  %v937_v1 = vand.u32 2147483648, %v2129_v52 }
 0x1b5   : > { %v1319_v51 = vpop.eup %1318  ;;  %v989_v33 = vsel %vm965_vm1, %v866_v28, %v1737_v36  ;;  %v765_v18 = vmul.f32 %v764_v6, %v2113_v3  ;;  %v665_v22 = vmul.f32 %v1317_v24, %v664_v29  ;;  %vm936_vm14 = vcmp.eq.f32.partialorder %v2129_v52, 0.0 }
 0x1b6   : > { %1021 = vst [vmem:[%s1789_s22 + $0xb8] sm:$0xff] %v989_v33  ;;  %v932_v45 = vmul.f32 %v1315_v44, %v931_v53  ;;  %v940_v60 = vmul.f32 %v1319_v51, %v2164_v56  ;;  %vm670_vm15 = vcmp.eq.f32.partialorder %v2156_v39, inf  ;;  %vm672_vm0 = vcmp.eq.f32.partialorder %v2156_v39, 0.0 }
 0x1b7   : > { %v767_v57 = vsel %vm766_vm11, %v2113_v3, %v765_v18  ;;  %v666_v61 = vmul.f32 0.5, %v665_v22  ;;  %v1321_v9 = vpop.eup %1320  ;;  %vm946_vm2 = vcmp.eq.f32.partialorder %v2164_v56, inf  ;;  %v949_v26 = vand.u32 2147483648, %v2164_v56 }
 0x1b8   : > { %v770_v62 = vsel %vm768_vm12, %v769_v58, %v767_v57  ;;  %v933_v36 = vmul.f32 %v932_v45, %v2129_v52  ;;  %v941_v17 = vmul.f32 %v1319_v51, %v940_v60  ;;  %v952_v50 = vmul.f32 %v1321_v9, %v2186_v2 }
 0x1b9   : > { %v981_v63 = vsel %vm965_vm1, %v770_v62, %v1739_v37  ;;  %v667_v12 = vsub.f32 1.5, %v666_v61  ;;  %vm948_vm3 = vcmp.eq.f32.partialorder %v2164_v56, 0.0  ;;  %vm958_vm4 = vcmp.eq.f32.partialorder %v2186_v2, inf }
 0x1ba   : > { %1013 = vst [vmem:[%s1789_s22 + $0x78] sm:$0xff] %v981_v63  ;;  %v935_v3 = vsel %vm934_vm13, %v2129_v52, %v933_v36  ;;  %v942_v10 = vmul.f32 0.5, %v941_v17  ;;  %v953_v55 = vmul.f32 %v1321_v9, %v952_v50  ;;  %v673_v52 = vand.u32 2147483648, %v2156_v39 }
 0x1bb   : > { %v938_v14 = vsel %vm936_vm14, %v937_v1, %v935_v3  ;;  %v668_v38 = vmul.f32 %v1317_v24, %v667_v12  ;;  %v961_v20 = vand.u32 2147483648, %v2186_v2  ;;  %vm960_vm5 = vcmp.eq.f32.partialorder %v2186_v2, 0.0 }
 0x1bc   : > { %v995_v4 = vsel %vm965_vm1, %v938_v14, %v1735_v35  ;;  %v943_v23 = vsub.f32 1.5, %v942_v10  ;;  %v954_v16 = vmul.f32 0.5, %v953_v55 }
 0x1bd   : > { %1027 = vst [vmem:[%s1789_s22 + $0xe8] sm:$0xff] %v995_v4  ;;  %v669_v37 = vmul.f32 %v668_v38, %v2156_v39 }
 0x1be   : > { %v944_v13 = vmul.f32 %v1319_v51, %v943_v23  ;;  %v955_v49 = vsub.f32 1.5, %v954_v16 }
 0x1bf   : > { %v671_v19 = vsel %vm670_vm15, %v2156_v39, %v669_v37 }
 0x1c0   : > { %v674_v35 = vsel %vm672_vm0, %v673_v52, %v671_v19  ;;  %v945_v44 = vmul.f32 %v944_v13, %v2164_v56  ;;  %v956_v8 = vmul.f32 %v1321_v9, %v955_v49 }
 0x1c1   : > { %v973_v25 = vsel %vm965_vm1, %v674_v35, %v1749_v42 }
 0x1c2   : > { %1005 = vst [vmem:[%s1789_s22 + $0x38] sm:$0xff] %v973_v25  ;;  %v947_v39 = vsel %vm946_vm2, %v2164_v56, %v945_v44  ;;  %v957_v27 = vmul.f32 %v956_v8, %v2186_v2 }
 0x1c3   : > { %v950_v32 = vsel %vm948_vm3, %v949_v26, %v947_v39 }
 0x1c4   : > { %v996_v42 = vsel %vm965_vm1, %v950_v32, %v1747_v41  ;;  %v959_v30 = vsel %vm958_vm4, %v2186_v2, %v957_v27 }
 0x1c5   : > { %1028 = vst [vmem:[%s1789_s22 + $0xf0] sm:$0xff] %v996_v42  ;;  %v962_v56 = vsel %vm960_vm5, %v961_v20, %v959_v30 }
 0x1c6   : > { %v997_v43 = vsel %vm965_vm1, %v962_v56, %v1757_v46 }
 0x1c7   : > { %1029 = vst [vmem:[%s1789_s22 + $0xf8] sm:$0xff] %v997_v43 }
 0x1c8   : > { %1349 = shalt.err (!%p1346_p3)
}
 0x1c9   : > { %s1386_s8 = smov 128   ;;  %s1387_s14 = smov 8  }
 0x1ca   : > { %1217 = dma.vmem_to_hbm [thread:$0]  (%p1441_p5), %s1044_s26, 4096, %s1046_s27, %s1031_s28, %s1386_s8, %s1386_s8, %s1387_s14  }
 0x1cb PF: > { %p1223_p4 = scmp.ge.s32.totalorder %s1384_s12, 2  ;;  %s1060_s16 = sand.u32 1, %s1372_s9  }
 0x1cc   : > { %s1061_s17 = scalar_lea.sflag [#allocation3], %s1060_s16 }
 0x1cd   : > { %p1220_p7 = pnand %p1223_p4, %p1445_p6 }
 0x1cf   : > { %p1221_p8 = pneg %p1220_p7 }
 0x1d1   : > { %1367 = dma.done.wait (%p1221_p8), %s1061_s17, 4096  }
 0x1d2   : > { %1369 = vsyncadd (%p1221_p8), %s1061_s17, 4294963200  ;;  %p12_p9 = scmp.ge.s32.totalorder %s1428_s15, 4   ;;  %s2296_s9 = smov %s1376_s10 }
 0x1d3   : > { %s2297_s10 = smov %s1380_s11  ;;  %s2298_s11 = smov %s1439_s18 }
 0x1d4   : > { %s2299_s12 = smov %s1428_s15  ;;  %14 = sbr.rel (!%p12_p9) target bundleno = 3 (0x3), region = 63 }
 0x1d9   :  { %1067 = vsyncpa [#allocation3], 1 }
 0x1da   :  { %1069 = vsyncpa [#allocation3 + $0x1], 1 }

</bundles_post_ra>
